<compile_context>
chip_gen: v6e
topology: v6e:2x2x1
jax: 0.10.0
libtpu: 0.0.40
codegen_flags: <defaults>
</compile_context>

<pallas_src>
import functools

import jax
import jax.numpy as jnp
from jax import lax
from jax.experimental import pallas as pl
from jax.experimental.pallas import tpu as pltpu

LN_EPS = 1e-5                     # torch.nn.LayerNorm default
_VMEM_LIMIT_BYTES = 32 << 20      # safe scoped limit on v5e/v6e (128 MiB) and v7x (64 MiB)
_TILE_BUDGET_BYTES = 12 << 20     # per-step buffer budget (leaves pipelining headroom)


def _round_up(x, m):
    return ((x + m - 1) // m) * m


def _pick_block_rows(rows, per_row_bytes, *, align, budget_bytes, cap=1024):
    cand = max(1, budget_bytes // max(per_row_bytes, 1))
    cand = max(align, (cand // align) * align)
    cand = min(cand, cap)
    return min(cand, _round_up(rows, align))


# ---------------------------------------------------------------------------
# Standalone LayerNorm kernel (used when `fn` is an arbitrary callable).
# ---------------------------------------------------------------------------
def _ln_kernel(x_ref, g_ref, b_ref, o_ref):
    # x_ref: (block_rows, dim); g_ref/b_ref: (1, dim)
    x = x_ref[...].astype(jnp.float32)
    mean = jnp.mean(x, axis=-1, keepdims=True)
    var = jnp.mean(x * x, axis=-1, keepdims=True) - mean * mean   # one-pass variance
    inv = lax.rsqrt(var + LN_EPS)
    y = (x - mean) * inv * g_ref[...].astype(jnp.float32) + b_ref[...].astype(jnp.float32)
    o_ref[...] = y.astype(o_ref.dtype)


@functools.partial(jax.jit, static_argnames=("block_rows",))
def _ln_pallas(x2d, gamma, beta, *, block_rows):
    rows, dim = x2d.shape
    grid = (rows // block_rows,)
    return pl.pallas_call(
        _ln_kernel,
        out_shape=jax.ShapeDtypeStruct((rows, dim), x2d.dtype),
        grid_spec=pltpu.PrefetchScalarGridSpec(
            num_scalar_prefetch=0,
            grid=grid,
            in_specs=[
                pl.BlockSpec((block_rows, dim), lambda i: (i, 0)),
                pl.BlockSpec((1, dim), lambda i: (0, 0)),
                pl.BlockSpec((1, dim), lambda i: (0, 0)),
            ],
            out_specs=pl.BlockSpec((block_rows, dim), lambda i: (i, 0)),
        ),
        compiler_params=pltpu.CompilerParams(
            dimension_semantics=("parallel",),
            vmem_limit_bytes=_VMEM_LIMIT_BYTES,
        ),
    )(x2d, gamma, beta)


def layernorm_pallas(x2d, gamma, beta):
    rows, dim = x2d.shape
    in_bytes = jnp.dtype(x2d.dtype).itemsize
    align = 16 if in_bytes == 2 else 8
    per_row = 4 * dim * in_bytes                      # (in + out) x double-buffering
    block_rows = _pick_block_rows(rows, per_row, align=align,
                                  budget_bytes=_TILE_BUDGET_BYTES)
    rows_pad = _round_up(rows, block_rows)
    xp = x2d if rows_pad == rows else jnp.pad(x2d, ((0, rows_pad - rows), (0, 0)))
    out = _ln_pallas(xp, gamma, beta, block_rows=block_rows)
    return out if rows_pad == rows else out[:rows]


# ---------------------------------------------------------------------------
# Fused LayerNorm + matmul kernel (used when `fn` is a LinearFn).
# The normalized tile is computed once (at N-tile 0) into VMEM scratch and
# reused for every N tile, feeding the MXU directly from VMEM.
# ---------------------------------------------------------------------------
def _ln_matmul_kernel(x_ref, g_ref, b_ref, w_ref, o_ref, y_scratch):
    @pl.when(pl.program_id(1) == 0)
    def _():
        x = x_ref[...].astype(jnp.float32)
        mean = jnp.mean(x, axis=-1, keepdims=True)
        var = jnp.mean(x * x, axis=-1, keepdims=True) - mean * mean
        inv = lax.rsqrt(var + LN_EPS)
        y_scratch[...] = ((x - mean) * inv * g_ref[...].astype(jnp.float32)
                          + b_ref[...].astype(jnp.float32))

    o_ref[...] = jnp.dot(
        y_scratch[...], w_ref[...].astype(jnp.float32),
        preferred_element_type=jnp.float32,
    ).astype(o_ref.dtype)


@functools.partial(jax.jit, static_argnames=("block_rows", "block_n"))
def _ln_matmul_pallas(x2d, gamma, beta, w, *, block_rows, block_n):
    rows, dim = x2d.shape
    n = w.shape[1]
    grid = (rows // block_rows, n // block_n)
    return pl.pallas_call(
        _ln_matmul_kernel,
        out_shape=jax.ShapeDtypeStruct((rows, n), x2d.dtype),
        grid_spec=pltpu.PrefetchScalarGridSpec(
            num_scalar_prefetch=0,
            grid=grid,
            in_specs=[
                pl.BlockSpec((block_rows, dim), lambda i, j: (i, 0)),
                pl.BlockSpec((1, dim), lambda i, j: (0, 0)),
                pl.BlockSpec((1, dim), lambda i, j: (0, 0)),
                pl.BlockSpec((dim, block_n), lambda i, j: (0, j)),
            ],
            out_specs=pl.BlockSpec((block_rows, block_n), lambda i, j: (i, j)),
            scratch_shapes=[pltpu.VMEM((block_rows, dim), jnp.float32)],
        ),
        compiler_params=pltpu.CompilerParams(
            # row axis sharded across TCs (v7x megacore); N axis must stay
            # sequential because the scratch is filled at j == 0.
            dimension_semantics=("parallel", "arbitrary"),
            vmem_limit_bytes=_VMEM_LIMIT_BYTES,
        ),
    )(x2d, gamma, beta, w)


def layernorm_matmul_pallas(x2d, gamma, beta, w):
    rows, dim = x2d.shape
    n = w.shape[1]
    in_bytes = jnp.dtype(x2d.dtype).itemsize
    w_bytes = jnp.dtype(w.dtype).itemsize
    align = 16 if in_bytes == 2 else 8

    # Lane-dense N tile that divides N exactly; fall back to full N.
    block_n = n
    for bn in (512, 256, 128):
        if n % bn == 0:
            block_n = bn
            break

    fixed = 2 * dim * block_n * w_bytes                               # w tile, double-buffered
    per_row = 2 * dim * in_bytes + 2 * block_n * in_bytes + dim * 4   # x, out, scratch
    budget = max(_TILE_BUDGET_BYTES - fixed, per_row * align)
    block_rows = _pick_block_rows(rows, per_row, align=align, budget_bytes=budget)

    rows_pad = _round_up(rows, block_rows)
    xp = x2d if rows_pad == rows else jnp.pad(x2d, ((0, rows_pad - rows), (0, 0)))
    out = _ln_matmul_pallas(xp, gamma, beta, w, block_rows=block_rows, block_n=block_n)
    return out if rows_pad == rows else out[:rows]


# ---------------------------------------------------------------------------
# Module wrappers.
# ---------------------------------------------------------------------------
class LinearFn:
    """A plain linear `fn` (y @ w [+ bias]) that PreNorm fuses into the kernel."""

    def __init__(self, w, bias=None):
        self.w = w
        self.bias = bias

    def __call__(self, y):
        out = y @ self.w
        return out if self.bias is None else out + self.bias


class PreNorm:
    """JAX/Pallas equivalent of the PyTorch PreNorm module.

    forward(x) = fn(LayerNorm(x)) with LayerNorm over the last dim.
    If fn is a LinearFn, LayerNorm and the matmul are fused in one kernel.
    """

    def __init__(self, dim, fn):
        self.dim = dim
        self.fn = fn
        # torch.nn.LayerNorm default init: weight=1, bias=0 (deterministic)
        self.gamma = jnp.ones((1, dim), dtype=jnp.float32)
        self.beta = jnp.zeros((1, dim), dtype=jnp.float32)

    def __call__(self, x, **kwargs):
        orig_shape = x.shape
        assert orig_shape[-1] == self.dim
        x2d = x.reshape(-1, self.dim)

        if isinstance(self.fn, LinearFn) and not kwargs:
            out2d = layernorm_matmul_pallas(x2d, self.gamma, self.beta, self.fn.w)
            if self.fn.bias is not None:
                out2d = out2d + self.fn.bias
            return out2d.reshape(*orig_shape[:-1], self.fn.w.shape[1])

        # Generic fn: standalone LN kernel, fn applied outside (fn is glue).
        y2d = layernorm_pallas(x2d, self.gamma, self.beta)
        return self.fn(y2d.reshape(orig_shape), **kwargs)


if __name__ == "__main__":
    key = jax.random.PRNGKey(0)
    batch, seq, dim = 2, 8, 128       # lane-dense last dim (multiple of 128)
    kx, kw = jax.random.split(key)
    x = jax.random.normal(kx, (batch, seq, dim), dtype=jnp.float32)
    w = jax.random.normal(kw, (dim, dim), dtype=jnp.float32) * 0.02

    # Pure-JAX LayerNorm reference.
    mean = jnp.mean(x, axis=-1, keepdims=True)
    var = jnp.mean((x - mean) ** 2, axis=-1, keepdims=True)
    ln_ref = (x - mean) / jnp.sqrt(var + LN_EPS)

    # 1) fn is a linear layer -> fused LN + matmul kernel path.
    prenorm_lin = PreNorm(dim, LinearFn(w))
    out_lin = jax.block_until_ready(prenorm_lin(x))
    ref_lin = jnp.einsum("bsd,dn->bsn", ln_ref, w, precision=lax.Precision.HIGHEST)
    assert out_lin.shape == (batch, seq, dim)
    assert jnp.allclose(out_lin, ref_lin, atol=1e-2, rtol=1e-2)

    # 2) generic fn -> standalone LN kernel, fn applied outside the kernel.
    prenorm_gelu = PreNorm(dim, jax.nn.gelu)
    out_gelu = jax.block_until_ready(prenorm_gelu(x))
    ref_gelu = jax.nn.gelu(ln_ref)
    assert out_gelu.shape == (batch, seq, dim)
    assert jnp.allclose(out_gelu, ref_gelu, atol=1e-4, rtol=1e-4)

    print("KERNEL_OK")
</pallas_src>

<mosaic_0001>
module attributes {stable_mosaic.version = 11 : i64} {
  func.func @_ln_matmul_kernel(%arg0: i32, %arg1: i32, %arg2: memref<16x128xf32, #tpu.memory_space<vmem>>, %arg3: memref<1x128xf32, #tpu.memory_space<vmem>>, %arg4: memref<1x128xf32, #tpu.memory_space<vmem>>, %arg5: memref<128x128xf32, #tpu.memory_space<vmem>>, %arg6: memref<16x128xf32, #tpu.memory_space<vmem>>, %arg7: memref<16x128xf32, #tpu.memory_space<vmem>>) attributes {dimension_semantics = [#tpu.dimension_semantics<parallel>, #tpu.dimension_semantics<arbitrary>], iteration_bounds = array<i64: 1, 1>, scalar_prefetch = 0 : i64, scratch_operands = 1 : i64, tpu.core_type = #tpu.core_type<tc>, window_params = [{transform_indices = @transform_0, window_bounds = array<i64: 16, 128>}, {pipeline_mode = #tpu.pipeline_mode<synchronous>, transform_indices = @transform_1, window_bounds = array<i64: 1, 128>}, {pipeline_mode = #tpu.pipeline_mode<synchronous>, transform_indices = @transform_2, window_bounds = array<i64: 1, 128>}, {transform_indices = @transform_3, window_bounds = array<i64: 128, 128>}, {transform_indices = @transform_4, window_bounds = array<i64: 16, 128>}]} {
    %c0_i32 = arith.constant 0 : i32
    %0 = arith.cmpi eq, %arg1, %c0_i32 : i32
    %1 = arith.extui %0 : i1 to i32
    %c0_i32_0 = arith.constant 0 : i32
    %2 = arith.cmpi ne, %1, %c0_i32_0 : i32
    scf.if %2 {
      %c0_6 = arith.constant 0 : index
      %c0_7 = arith.constant 0 : index
      %7 = vector.load %arg2[%c0_6, %c0_7] : memref<16x128xf32, #tpu.memory_space<vmem>>, vector<16x128xf32>
      %cst_8 = arith.constant dense<0.000000e+00> : vector<16xf32>
      %8 = vector.multi_reduction <add>, %7, %cst_8 [1] : vector<16x128xf32> to vector<16xf32>
      %9 = vector.shape_cast %8 : vector<16xf32> to vector<16x1xf32>
      %cst_9 = arith.constant 1.280000e+02 : f32
      %10 = vector.broadcast %cst_9 : f32 to vector<16x1xf32>
      %11 = arith.divf %9, %10 : vector<16x1xf32>
      %12 = arith.mulf %7, %7 : vector<16x128xf32>
      %cst_10 = arith.constant dense<0.000000e+00> : vector<16xf32>
      %13 = vector.multi_reduction <add>, %12, %cst_10 [1] : vector<16x128xf32> to vector<16xf32>
      %14 = vector.shape_cast %13 : vector<16xf32> to vector<16x1xf32>
      %cst_11 = arith.constant 1.280000e+02 : f32
      %15 = vector.broadcast %cst_11 : f32 to vector<16x1xf32>
      %16 = arith.divf %14, %15 : vector<16x1xf32>
      %17 = arith.mulf %11, %11 : vector<16x1xf32>
      %18 = arith.subf %16, %17 : vector<16x1xf32>
      %cst_12 = arith.constant 9.99999974E-6 : f32
      %19 = vector.broadcast %cst_12 : f32 to vector<16x1xf32>
      %20 = arith.addf %18, %19 : vector<16x1xf32>
      %21 = math.rsqrt %20 : vector<16x1xf32>
      %22 = vector.broadcast %11 : vector<16x1xf32> to vector<16x128xf32>
      %23 = arith.subf %7, %22 : vector<16x128xf32>
      %24 = vector.broadcast %21 : vector<16x1xf32> to vector<16x128xf32>
      %25 = arith.mulf %23, %24 : vector<16x128xf32>
      %c0_13 = arith.constant 0 : index
      %c0_14 = arith.constant 0 : index
      %26 = vector.load %arg3[%c0_13, %c0_14] : memref<1x128xf32, #tpu.memory_space<vmem>>, vector<1x128xf32>
      %27 = vector.broadcast %26 : vector<1x128xf32> to vector<16x128xf32>
      %28 = arith.mulf %25, %27 : vector<16x128xf32>
      %c0_15 = arith.constant 0 : index
      %c0_16 = arith.constant 0 : index
      %29 = vector.load %arg4[%c0_15, %c0_16] : memref<1x128xf32, #tpu.memory_space<vmem>>, vector<1x128xf32>
      %30 = vector.broadcast %29 : vector<1x128xf32> to vector<16x128xf32>
      %31 = arith.addf %28, %30 : vector<16x128xf32>
      %c0_17 = arith.constant 0 : index
      %c0_18 = arith.constant 0 : index
      %32 = vector.load %arg7[%c0_17, %c0_18] : memref<16x128xf32, #tpu.memory_space<vmem>>, vector<16x128xf32>
      tpu.vector_store %arg7[%c0_17, %c0_18], %31 {strides = array<i32>} : memref<16x128xf32, #tpu.memory_space<vmem>>, vector<16x128xf32>,
    } else {
    }
    %c0 = arith.constant 0 : index
    %c0_1 = arith.constant 0 : index
    %3 = vector.load %arg7[%c0, %c0_1] : memref<16x128xf32, #tpu.memory_space<vmem>>, vector<16x128xf32>
    %c0_2 = arith.constant 0 : index
    %c0_3 = arith.constant 0 : index
    %4 = vector.load %arg5[%c0_2, %c0_3] : memref<128x128xf32, #tpu.memory_space<vmem>>, vector<128x128xf32>
    %cst = arith.constant dense<0.000000e+00> : vector<16x128xf32>
    %5 = tpu.matmul %3, %4, %cst {dimension_numbers = #tpu.dot_dimension_numbers<[1], [0], [0], [1], [0, 0, 1, 1], [], []>} : vector<16x128xf32>, vector<128x128xf32>, vector<16x128xf32> -> vector<16x128xf32>
    %c0_4 = arith.constant 0 : index
    %c0_5 = arith.constant 0 : index
    %6 = vector.load %arg6[%c0_4, %c0_5] : memref<16x128xf32, #tpu.memory_space<vmem>>, vector<16x128xf32>
    tpu.vector_store %arg6[%c0_4, %c0_5], %5 {strides = array<i32>} : memref<16x128xf32, #tpu.memory_space<vmem>>, vector<16x128xf32>,
    return
  }
  func.func @transform_0(%arg0: i32, %arg1: i32) -> (i32, i32) {
    %c0_i32 = arith.constant 0 : i32
    %c0_i32_0 = arith.constant 0 : i32
    return %arg0, %c0_i32 : i32, i32
  }
  func.func @transform_1(%arg0: i32, %arg1: i32) -> (i32, i32) {
    %c0_i32 = arith.constant 0 : i32
    %c0_i32_0 = arith.constant 0 : i32
    %c0_i32_1 = arith.constant 0 : i32
    return %c0_i32, %c0_i32_0 : i32, i32
  }
  func.func @transform_2(%arg0: i32, %arg1: i32) -> (i32, i32) {
    %c0_i32 = arith.constant 0 : i32
    %c0_i32_0 = arith.constant 0 : i32
    %c0_i32_1 = arith.constant 0 : i32
    return %c0_i32, %c0_i32_0 : i32, i32
  }
  func.func @transform_3(%arg0: i32, %arg1: i32) -> (i32, i32) {
    %c0_i32 = arith.constant 0 : i32
    %c0_i32_0 = arith.constant 0 : i32
    return %c0_i32, %arg1 : i32, i32
  }
  func.func @transform_4(%arg0: i32, %arg1: i32) -> (i32, i32) {
    %c0_i32 = arith.constant 0 : i32
    return %arg0, %arg1 : i32, i32
  }
}

</mosaic_0001>

<bundles_post_ra>
// kernel: _ln_matmul_pallas.1
= control target key start
LH: loop header
LB: loop body
LE: loop exit
PB: predicated region body
PF: predicated region fallthrough
CT: control target
= control target key end

     0   :  { %9 = vsyncpa [#allocation4], 0  ;;  %s408_s0 = inlined_call_operand.hbm [shape: f32[16,128], index: 0, kind: input, shape index: {}]   ;;  %s409_s1 = inlined_call_operand.vmem [shape: f32[1,128], index: 1, kind: input, shape index: {}]   ;;  %s410_s2 = inlined_call_operand.vmem [shape: f32[1,128], index: 2, kind: input, shape index: {}]   ;;  %s411_s3 = inlined_call_operand.hbm [shape: f32[128,128], index: 3, kind: input, shape index: {}]   ;;  %s412_s4 = inlined_call_operand.hbm [shape: f32[16,128], index: 4, kind: output, shape index: {}]  }
   0x1   :  { %10 = vsyncpa [#allocation7], 0 }
   0x2   :  { %11 = vsyncpa [#allocation5], 0  ;;  %s342_s15 = smov [#allocation3]  }
   0x3   :  { %s17_s16 = sshll.u32 %s342_s15, 4  ;;  %s18_s16 = int_to_ptr.vmem [resolvable:$true] %s17_s16 }
   0x4   :  { %s284_s17 = scalar_lea.vmem %s18_s16, 256  ;;  %p289_p1 = scmp.lt.s32.totalorder %s18_s16, %s18_s16 }
   0x5   :  { %p285_p0 = scmp.ne.s32.totalorder %s18_s16, %s284_s17  ;;  %p290_p2 = scmp.lt.s32.totalorder %s284_s17, %s284_s17 }
   0x7   :  { %p291_p3 = por %p290_p2, %p289_p1 }
   0x9   :  { %p292_p4 = pnand %p291_p3, %p285_p0 }
   0xb   :  { %295 = shalt.err (!%p292_p4)
}
   0xc   :  { %s343_s18 = smov 128   ;;  %s344_s19 = smov 8  }
   0xd   :  { %23 = dma.hbm_to_vmem [thread:$0]  %s408_s0, 256, %s18_s16, [#allocation4], %s343_s18, %s343_s18, %s344_s19  }
   0xe   :  { %s345_s22 = smov [#allocation6]  }
   0xf   :  { %s33_s23 = sshll.u32 %s345_s22, 4  ;;  %s34_s23 = int_to_ptr.vmem [resolvable:$true] %s33_s23 }
  0x10   :  { %s304_s24 = scalar_lea.vmem %s34_s23, 2048  ;;  %p309_p6 = scmp.lt.s32.totalorder %s34_s23, %s34_s23 }
  0x11   :  { %p305_p5 = scmp.ne.s32.totalorder %s34_s23, %s304_s24  ;;  %p310_p7 = scmp.lt.s32.totalorder %s304_s24, %s304_s24 }
  0x13   :  { %p311_p8 = por %p310_p7, %p309_p6 }
  0x15   :  { %p312_p9 = pnand %p311_p8, %p305_p5 }
  0x17   :  { %315 = shalt.err (!%p312_p9)
}
  0x18   :  { %39 = dma.hbm_to_vmem [thread:$0]  %s411_s3, 2048, %s34_s23, [#allocation7], %s343_s18, %s343_s18, %s344_s19  }
  0x19   :  { %336 = dma.done.wait [#allocation4], 256  }
  0x1a   :  { %337 = vsyncadd [#allocation4], 4294967040 }
  0x1b   :  { %338 = dma.done.wait [#allocation7], 2048  }
  0x1c   :  { %339 = vsyncadd [#allocation7], 4294965248  ;;  %v384_v0 = vld [vmem:[#allocation3] sm:$0xff]  ;;  %v386_v1 = vld [vmem:[#allocation3 + $0x8] sm:$0xff]  ;;  %s346_s29 = smov [#allocation8]  }
  0x1d   :  { %52 = vadd.xlane.f32.xlu0 %v384_v0  ;;  %v59_v2 = vmul.f32 %v384_v0, %v384_v0  ;;  %v60_v3 = vmul.f32 %v386_v1, %v386_v1  ;;  %v116_v4 = vld [vmem:[#allocation6 + $0x78] sm:$0xff]  ;;  %v115_v5 = vld [vmem:[#allocation6 + $0x70] sm:$0xff]  ;;  %v114_v6 = vld [vmem:[#allocation6 + $0x68] sm:$0xff]  ;;  %s199_s30 = sshll.u32 %s346_s29, 4  ;;  %s200_s30 = int_to_ptr.vmem [resolvable:$true] %s199_s30 }
  0x1e   :  { %232 = vmatprep.subr.mxu0 %v116_v4  ;;  %v113_v7 = vld [vmem:[#allocation6 + $0x60] sm:$0xff]  ;;  %v112_v8 = vld [vmem:[#allocation6 + $0x58] sm:$0xff]  ;;  %v111_v9 = vld [vmem:[#allocation6 + $0x50] sm:$0xff]  ;;  %p321_p11 = scmp.lt.s32.totalorder %s200_s30, %s200_s30 }
  0x1f   :  { %61 = vadd.xlane.f32.xlu1 %v59_v2  ;;  %233 = vmatpush3.msra.mxu0 %v116_v4  ;;  %v110_v10 = vld [vmem:[#allocation6 + $0x48] sm:$0xff]  ;;  %v109_v11 = vld [vmem:[#allocation6 + $0x40] sm:$0xff]  ;;  %v108_v12 = vld [vmem:[#allocation6 + $0x38] sm:$0xff] }
  0x20   :  { %234 = vmatprep.subr.mxu0 %v115_v5  ;;  %v107_v13 = vld [vmem:[#allocation6 + $0x30] sm:$0xff]  ;;  %v106_v14 = vld [vmem:[#allocation6 + $0x28] sm:$0xff]  ;;  %v105_v15 = vld [vmem:[#allocation6 + $0x20] sm:$0xff] }
  0x21   :  { %54 = vadd.xlane.f32.xlu0 %v386_v1  ;;  %235 = vmatpush3.msra.mxu0 %v115_v5  ;;  %v104_v16 = vld [vmem:[#allocation6 + $0x18] sm:$0xff]  ;;  %v103_v17 = vld [vmem:[#allocation6 + $0x10] sm:$0xff]  ;;  %v102_v18 = vld [vmem:[#allocation6 + $0x8] sm:$0xff] }
  0x22   :  { %236 = vmatprep.subr.mxu0 %v114_v6  ;;  %v101_v19 = vld [vmem:[#allocation6] sm:$0xff]  ;;  %v212_v36 = vld [vmem:[%s409_s1] ss:$0 sm:$0xff]  ;;  %s316_s1 = scalar_lea.vmem %s200_s30, 256 }
  0x23   :  { %63 = vadd.xlane.f32.xlu1 %v60_v3  ;;  %237 = vmatpush3.msra.mxu0 %v114_v6  ;;  %v213_v38 = vld [vmem:[%s410_s2] ss:$0 sm:$0xff]  ;;  %p317_p10 = scmp.ne.s32.totalorder %s200_s30, %s316_s1  ;;  %p322_p12 = scmp.lt.s32.totalorder %s316_s1, %s316_s1 }
  0x24   :  { %238 = vmatprep.subr.mxu0 %v113_v7 }
  0x25   :  { %239 = vmatpush3.msra.mxu0 %v113_v7  ;;  %p323_p13 = por %p322_p12, %p321_p11 }
  0x26   :  { %240 = vmatprep.subr.mxu0 %v112_v8 }
  0x27   :  { %241 = vmatpush3.msra.mxu0 %v112_v8  ;;  %p324_p0 = pnand %p323_p13, %p317_p10 }
  0x28   :  { %242 = vmatprep.subr.mxu0 %v111_v9 }
  0x29   :  { %243 = vmatpush3.msra.mxu0 %v111_v9 }
  0x2a   :  { %244 = vmatprep.subr.mxu0 %v110_v10 }
  0x2b   :  { %245 = vmatpush3.msra.mxu0 %v110_v10 }
  0x2c   :  { %246 = vmatprep.subr.mxu0 %v109_v11 }
  0x2d   :  { %247 = vmatpush3.msra.mxu0 %v109_v11 }
  0x2e   :  { %248 = vmatprep.subr.mxu0 %v108_v12 }
  0x2f   :  { %249 = vmatpush3.msra.mxu0 %v108_v12 }
  0x30   :  { %250 = vmatprep.subr.mxu0 %v107_v13 }
  0x31   :  { %251 = vmatpush3.msra.mxu0 %v107_v13 }
  0x32   :  { %252 = vmatprep.subr.mxu0 %v106_v14 }
  0x33   :  { %253 = vmatpush3.msra.mxu0 %v106_v14 }
  0x34   :  { %254 = vmatprep.subr.mxu0 %v105_v15 }
  0x35   :  { %255 = vmatpush3.msra.mxu0 %v105_v15 }
  0x36   :  { %256 = vmatprep.subr.mxu0 %v104_v16 }
  0x37   :  { %257 = vmatpush3.msra.mxu0 %v104_v16 }
  0x38   :  { %258 = vmatprep.subr.mxu0 %v103_v17 }
  0x39   :  { %259 = vmatpush3.msra.mxu0 %v103_v17 }
  0x3a   :  { %260 = vmatprep.subr.mxu0 %v102_v18 }
  0x3b   :  { %261 = vmatpush3.msra.mxu0 %v102_v18 }
  0x3c   :  { %262 = vmatprep.subr.mxu0 %v101_v19 }
  0x3d   :  { %263 = vmatpush3.msra.mxu0 %v101_v19 }
  0xa6   :  { %v53_v20 = vpop.xlane.xlu0 %52 }
  0xa7   :  { %v57_v21 = vmul.f32 0.0078125, %v53_v20 }
  0xa8   :  { %v62_v22 = vpop.xlane.xlu1 %61 }
  0xa9   :  { %v67_v23 = vmul.f32 %v57_v21, %v57_v21  ;;  %v65_v24 = vmul.f32 0.0078125, %v62_v22  ;;  %v75_v34 = vsub.f32 %v384_v0, %v57_v21 }
  0xaa   :  { %v55_v25 = vpop.xlane.xlu0 %54 }
  0xab   :  { %v69_v26 = vsub.f32 %v65_v24, %v67_v23  ;;  %v58_v27 = vmul.f32 0.0078125, %v55_v25 }
  0xac   :  { %v64_v28 = vpop.xlane.xlu1 %63 }
  0xad   :  { %v71_v29 = vadd.f32 1e-05, %v69_v26  ;;  %v68_v30 = vmul.f32 %v58_v27, %v58_v27  ;;  %v66_v31 = vmul.f32 0.0078125, %v64_v28  ;;  %v76_v39 = vsub.f32 %v386_v1, %v58_v27 }
  0xaf   :  { %272 = vrsqrt.f32 %v71_v29  ;;  %v70_v32 = vsub.f32 %v66_v31, %v68_v30 }
  0xb1   :  { %v72_v33 = vadd.f32 1e-05, %v70_v32 }
  0xb3   :  { %274 = vrsqrt.f32 %v72_v33 }
  0xbc   :  { %v273_v35 = vpop.eup %272 }
  0xbd   :  { %v77_v37 = vmul.f32 %v273_v35, %v75_v34 }
  0xbf   :  { %v86_v40 = vmul.f32 %v212_v36, %v77_v37 }
  0xc0   :  { %v275_v41 = vpop.eup %274 }
  0xc1   :  { %v78_v42 = vmul.f32 %v275_v41, %v76_v39  ;;  %v95_v43 = vadd.f32 %v213_v38, %v86_v40 }
  0xc3   :  { %v87_v44 = vmul.f32 %v212_v36, %v78_v42  ;;  %264 = vmatprep.mubr.f32.mxu0 %v95_v43 }
  0xc5   :  { %v96_v45 = vadd.f32 %v213_v38, %v87_v44 }
  0xc7   :  { %265 = vmatmul.mubr.f32.vlgmr.msra.gmra.mxu0 %v96_v45 }
 0x187   :  { %v266_v46 = vpop.f32.mrf.mxu0 }
 0x188   :  { %193 = vst [vmem:[#allocation8 + $0x8] sm:$0xff] %v266_v46 }
 0x189   :  { %v183_v47 = vpop.f32.mrf.mxu0 }
 0x18a   :  { %192 = vst [vmem:[#allocation8] sm:$0xff] %v183_v47 }
 0x18b   :  { %327 = shalt.err (!%p324_p0)
}
 0x18c   :  { %205 = dma.vmem_to_hbm [thread:$0]  %s200_s30, 256, %s412_s4, [#allocation5], %s343_s18, %s343_s18, %s344_s19  }
 0x18d   :  { %340 = dma.done.wait [#allocation5], 256  }
 0x18e   :  { %341 = vsyncadd [#allocation5], 4294967040 }
 0x18f   :  { %209 = vsyncpa [#allocation4], 1 }
 0x190   :  { %210 = vsyncpa [#allocation7], 1 }
 0x191   :  { %211 = vsyncpa [#allocation5], 1 }

</bundles_post_ra>
